<compile_context>
chip_gen: v6e
topology: v6e:2x2x1
jax: 0.10.0
libtpu: 0.0.40
codegen_flags: <defaults>
</compile_context>

<pallas_src>
import math
import functools

import jax
import jax.numpy as jnp
import numpy as np
from jax import lax
from jax.experimental import pallas as pl
from jax.experimental.pallas import tpu as pltpu


def _mha_kernel(xq_ref, xkv_ref, mask_ref,
                wq_ref, bq_ref, wk_ref, bk_ref, wv_ref, bv_ref,
                out_ref, *, head_num, dqk, dv):
    xq = xq_ref[0]       # (Lq, E)
    xkv = xkv_ref[0]     # (Lk, E)

    # Fused projections for all heads at once (scale already folded into wq/bq).
    q = jnp.dot(xq, wq_ref[...], preferred_element_type=jnp.float32) + bq_ref[...]   # (Lq, H*Dqk)
    k = jnp.dot(xkv, wk_ref[...], preferred_element_type=jnp.float32) + bk_ref[...]  # (Lk, H*Dqk)
    v = jnp.dot(xkv, wv_ref[...], preferred_element_type=jnp.float32) + bv_ref[...]  # (Lk, H*Dv)

    mask = mask_ref[0] != 0          # (Lq, Lk) bool, True == masked
    neg = jnp.float32(-1000000000.0)

    outs = []
    for h in range(head_num):        # static unroll; no grid-step overhead
        qh = q[:, h * dqk:(h + 1) * dqk]     # (Lq, Dqk)
        kh = k[:, h * dqk:(h + 1) * dqk]     # (Lk, Dqk)
        vh = v[:, h * dv:(h + 1) * dv]       # (Lk, Dv)

        # scores: contract last dims directly (no k transpose)
        s = lax.dot_general(qh, kh, dimension_numbers=(((1,), (1,)), ((), ())),
                            preferred_element_type=jnp.float32)   # (Lq, Lk)
        s = jnp.where(mask, neg, s)

        # softmax over Lk (reciprocal on EUP)
        m = jnp.max(s, axis=-1, keepdims=True)
        e = jnp.exp(s - m)
        p = e * pl.reciprocal(jnp.sum(e, axis=-1, keepdims=True), approx=True)

        outs.append(jnp.dot(p, vh, preferred_element_type=jnp.float32))   # (Lq, Dv)

    # one lane-dense store of the full (Lq, H*Dv) slab
    out_ref[0] = jnp.concatenate(outs, axis=-1)


def multi_head_attention(x_q, x_kv, attn_mask, params, *, head_num,
                         query_key_size, value_size):
    B, Lq, E = x_q.shape
    _, Lk, _ = x_kv.shape
    H, Dqk, Dv = head_num, query_key_size, value_size

    # Fold the 1/sqrt(Dqk) attention scale into the query projection.
    scale = jnp.float32(1.0 / math.sqrt(Dqk))
    wq = (params["wq"] * scale).astype(jnp.float32)                  # (E, H*Dqk)
    bq = (params["bq"] * scale).reshape(1, H * Dqk).astype(jnp.float32)
    wk = params["wk"].astype(jnp.float32)                            # (E, H*Dqk)
    bk = params["bk"].reshape(1, H * Dqk).astype(jnp.float32)
    wv = params["wv"].astype(jnp.float32)                            # (E, H*Dv)
    bv = params["bv"].reshape(1, H * Dv).astype(jnp.float32)

    mask_i8 = attn_mask.astype(jnp.int8)

    kernel = functools.partial(_mha_kernel, head_num=H, dqk=Dqk, dv=Dv)

    out = pl.pallas_call(
        kernel,
        out_shape=jax.ShapeDtypeStruct((B, Lq, H * Dv), jnp.float32),
        grid_spec=pltpu.PrefetchScalarGridSpec(
            num_scalar_prefetch=0,
            grid=(B,),
            in_specs=[
                pl.BlockSpec((1, Lq, E), lambda b: (b, 0, 0)),        # x_q
                pl.BlockSpec((1, Lk, E), lambda b: (b, 0, 0)),        # x_kv
                pl.BlockSpec((1, Lq, Lk), lambda b: (b, 0, 0)),       # mask (int8)
                pl.BlockSpec((E, H * Dqk), lambda b: (0, 0)),         # wq (resident)
                pl.BlockSpec((1, H * Dqk), lambda b: (0, 0)),         # bq
                pl.BlockSpec((E, H * Dqk), lambda b: (0, 0)),         # wk
                pl.BlockSpec((1, H * Dqk), lambda b: (0, 0)),         # bk
                pl.BlockSpec((E, H * Dv), lambda b: (0, 0)),          # wv
                pl.BlockSpec((1, H * Dv), lambda b: (0, 0)),          # bv
            ],
            out_specs=pl.BlockSpec((1, Lq, H * Dv), lambda b: (b, 0, 0)),
        ),
        compiler_params=pltpu.CompilerParams(
            dimension_semantics=("parallel",)),
    )(x_q, x_kv, mask_i8, wq, bq, wk, bk, wv, bv)

    return out   # (B, Lq, H*Dv) -- already in torch output layout


def _reference(x_q, x_kv, attn_mask, params, *, head_num, query_key_size, value_size):
    """Pure-JAX reference mirroring the PyTorch forward exactly."""
    B, Lq, E = x_q.shape
    _, Lk, _ = x_kv.shape
    H, Dqk, Dv = head_num, query_key_size, value_size

    q = x_q @ params["wq"] + params["bq"]      # (B, Lq, H*Dqk)
    k = x_kv @ params["wk"] + params["bk"]     # (B, Lk, H*Dqk)
    v = x_kv @ params["wv"] + params["bv"]     # (B, Lk, H*Dv)

    q = q.reshape(B, Lq, H, Dqk).transpose(0, 2, 1, 3)
    k = k.reshape(B, Lk, H, Dqk).transpose(0, 2, 1, 3)
    v = v.reshape(B, Lk, H, Dv).transpose(0, 2, 1, 3)

    attn = jnp.einsum("bhqd,bhkd->bhqk", q, k) / math.sqrt(Dqk)
    attn = jnp.where(attn_mask[:, None, :, :], -1000000000.0, attn)
    attn = jax.nn.softmax(attn, axis=-1)
    z = jnp.einsum("bhqk,bhkd->bhqd", attn, v)
    return z.transpose(0, 2, 1, 3).reshape(B, Lq, H * Dv)


if __name__ == "__main__":
    # Small shapes consistent with the module.
    B, Lq, Lk = 2, 8, 8
    E = 32          # emb_size
    H = 4           # head_num
    Dqk = 8         # query_key_size
    Dv = 8          # value_size

    key = jax.random.PRNGKey(0)
    ks = jax.random.split(key, 10)

    x_q = jax.random.normal(ks[0], (B, Lq, E), dtype=jnp.float32)
    x_kv = jax.random.normal(ks[1], (B, Lk, E), dtype=jnp.float32)
    # boolean mask: True = masked position (torch masked_fill semantics)
    attn_mask = jax.random.bernoulli(ks[2], p=0.2, shape=(B, Lq, Lk))

    # deterministic parameter init (nn.Linear-style uniform(-1/sqrt(E), 1/sqrt(E)))
    bound = 1.0 / math.sqrt(E)

    def uni(k, shape):
        return jax.random.uniform(k, shape, jnp.float32, -bound, bound)

    params = {
        "wq": uni(ks[3], (E, H * Dqk)),
        "bq": uni(ks[4], (H * Dqk,)),
        "wk": uni(ks[5], (E, H * Dqk)),
        "bk": uni(ks[6], (H * Dqk,)),
        "wv": uni(ks[7], (E, H * Dv)),
        "bv": uni(ks[8], (H * Dv,)),
    }

    out = multi_head_attention(x_q, x_kv, attn_mask, params,
                               head_num=H, query_key_size=Dqk, value_size=Dv)
    out = jax.block_until_ready(out)

    ref = _reference(x_q, x_kv, attn_mask, params,
                     head_num=H, query_key_size=Dqk, value_size=Dv)
    # tolerance accounts for the approximate (EUP) reciprocal in the softmax
    np.testing.assert_allclose(np.asarray(out), np.asarray(ref), atol=5e-3, rtol=5e-3)

    print("KERNEL_OK")
</pallas_src>

<mosaic_0001>
module attributes {stable_mosaic.version = 11 : i64} {
  func.func @_mha_kernel(%arg0: i32, %arg1: memref<1x8x32xf32, #tpu.memory_space<vmem>>, %arg2: memref<1x8x32xf32, #tpu.memory_space<vmem>>, %arg3: memref<1x8x8xi8, #tpu.memory_space<vmem>>, %arg4: memref<32x32xf32, #tpu.memory_space<vmem>>, %arg5: memref<1x32xf32, #tpu.memory_space<vmem>>, %arg6: memref<32x32xf32, #tpu.memory_space<vmem>>, %arg7: memref<1x32xf32, #tpu.memory_space<vmem>>, %arg8: memref<32x32xf32, #tpu.memory_space<vmem>>, %arg9: memref<1x32xf32, #tpu.memory_space<vmem>>, %arg10: memref<1x8x32xf32, #tpu.memory_space<vmem>>) attributes {dimension_semantics = [#tpu.dimension_semantics<parallel>], iteration_bounds = array<i64: 2>, scalar_prefetch = 0 : i64, scratch_operands = 0 : i64, tpu.core_type = #tpu.core_type<tc>, window_params = [{transform_indices = @transform_0, window_bounds = array<i64: 1, 8, 32>}, {transform_indices = @transform_1, window_bounds = array<i64: 1, 8, 32>}, {transform_indices = @transform_2, window_bounds = array<i64: 1, 8, 8>}, {pipeline_mode = #tpu.pipeline_mode<synchronous>, transform_indices = @transform_3, window_bounds = array<i64: 32, 32>}, {pipeline_mode = #tpu.pipeline_mode<synchronous>, transform_indices = @transform_4, window_bounds = array<i64: 1, 32>}, {pipeline_mode = #tpu.pipeline_mode<synchronous>, transform_indices = @transform_5, window_bounds = array<i64: 32, 32>}, {pipeline_mode = #tpu.pipeline_mode<synchronous>, transform_indices = @transform_6, window_bounds = array<i64: 1, 32>}, {pipeline_mode = #tpu.pipeline_mode<synchronous>, transform_indices = @transform_7, window_bounds = array<i64: 32, 32>}, {pipeline_mode = #tpu.pipeline_mode<synchronous>, transform_indices = @transform_8, window_bounds = array<i64: 1, 32>}, {transform_indices = @transform_9, window_bounds = array<i64: 1, 8, 32>}]} {
    %c0 = arith.constant 0 : index
    %c0_0 = arith.constant 0 : index
    %c0_1 = arith.constant 0 : index
    %0 = vector.load %arg1[%c0, %c0_0, %c0_1] : memref<1x8x32xf32, #tpu.memory_space<vmem>>, vector<1x8x32xf32>
    %1 = vector.shape_cast %0 : vector<1x8x32xf32> to vector<8x32xf32>
    %c0_2 = arith.constant 0 : index
    %c0_3 = arith.constant 0 : index
    %c0_4 = arith.constant 0 : index
    %2 = vector.load %arg2[%c0_2, %c0_3, %c0_4] : memref<1x8x32xf32, #tpu.memory_space<vmem>>, vector<1x8x32xf32>
    %3 = vector.shape_cast %2 : vector<1x8x32xf32> to vector<8x32xf32>
    %c0_5 = arith.constant 0 : index
    %c0_6 = arith.constant 0 : index
    %4 = vector.load %arg4[%c0_5, %c0_6] : memref<32x32xf32, #tpu.memory_space<vmem>>, vector<32x32xf32>
    %cst = arith.constant dense<0.000000e+00> : vector<8x32xf32>
    %5 = tpu.matmul %1, %4, %cst {dimension_numbers = #tpu.dot_dimension_numbers<[1], [0], [0], [1], [0, 0, 1, 1], [], []>} : vector<8x32xf32>, vector<32x32xf32>, vector<8x32xf32> -> vector<8x32xf32>
    %c0_7 = arith.constant 0 : index
    %c0_8 = arith.constant 0 : index
    %6 = vector.load %arg5[%c0_7, %c0_8] : memref<1x32xf32, #tpu.memory_space<vmem>>, vector<1x32xf32>
    %7 = vector.broadcast %6 : vector<1x32xf32> to vector<8x32xf32>
    %8 = arith.addf %5, %7 : vector<8x32xf32>
    %c0_9 = arith.constant 0 : index
    %c0_10 = arith.constant 0 : index
    %9 = vector.load %arg6[%c0_9, %c0_10] : memref<32x32xf32, #tpu.memory_space<vmem>>, vector<32x32xf32>
    %cst_11 = arith.constant dense<0.000000e+00> : vector<8x32xf32>
    %10 = tpu.matmul %3, %9, %cst_11 {dimension_numbers = #tpu.dot_dimension_numbers<[1], [0], [0], [1], [0, 0, 1, 1], [], []>} : vector<8x32xf32>, vector<32x32xf32>, vector<8x32xf32> -> vector<8x32xf32>
    %c0_12 = arith.constant 0 : index
    %c0_13 = arith.constant 0 : index
    %11 = vector.load %arg7[%c0_12, %c0_13] : memref<1x32xf32, #tpu.memory_space<vmem>>, vector<1x32xf32>
    %12 = vector.broadcast %11 : vector<1x32xf32> to vector<8x32xf32>
    %13 = arith.addf %10, %12 : vector<8x32xf32>
    %c0_14 = arith.constant 0 : index
    %c0_15 = arith.constant 0 : index
    %14 = vector.load %arg8[%c0_14, %c0_15] : memref<32x32xf32, #tpu.memory_space<vmem>>, vector<32x32xf32>
    %cst_16 = arith.constant dense<0.000000e+00> : vector<8x32xf32>
    %15 = tpu.matmul %3, %14, %cst_16 {dimension_numbers = #tpu.dot_dimension_numbers<[1], [0], [0], [1], [0, 0, 1, 1], [], []>} : vector<8x32xf32>, vector<32x32xf32>, vector<8x32xf32> -> vector<8x32xf32>
    %c0_17 = arith.constant 0 : index
    %c0_18 = arith.constant 0 : index
    %16 = vector.load %arg9[%c0_17, %c0_18] : memref<1x32xf32, #tpu.memory_space<vmem>>, vector<1x32xf32>
    %17 = vector.broadcast %16 : vector<1x32xf32> to vector<8x32xf32>
    %18 = arith.addf %15, %17 : vector<8x32xf32>
    %c0_19 = arith.constant 0 : index
    %c0_20 = arith.constant 0 : index
    %c0_21 = arith.constant 0 : index
    %19 = vector.load %arg3[%c0_19, %c0_20, %c0_21] : memref<1x8x8xi8, #tpu.memory_space<vmem>>, vector<1x8x8xi8>
    %20 = vector.shape_cast %19 : vector<1x8x8xi8> to vector<8x8xi8>
    %c0_i8 = arith.constant 0 : i8
    %21 = vector.broadcast %c0_i8 : i8 to vector<8x8xi8>
    %22 = arith.cmpi ne, %20, %21 : vector<8x8xi8>
    %23 = vector.extract_strided_slice %8 {offsets = [0, 0], sizes = [8, 8], strides = [1, 1]} : vector<8x32xf32> to vector<8x8xf32>
    %24 = vector.extract_strided_slice %13 {offsets = [0, 0], sizes = [8, 8], strides = [1, 1]} : vector<8x32xf32> to vector<8x8xf32>
    %25 = vector.extract_strided_slice %18 {offsets = [0, 0], sizes = [8, 8], strides = [1, 1]} : vector<8x32xf32> to vector<8x8xf32>
    %cst_22 = arith.constant dense<0.000000e+00> : vector<8x8xf32>
    %26 = tpu.matmul %23, %24, %cst_22 {dimension_numbers = #tpu.dot_dimension_numbers<[1], [1], [0], [0], [0, 0, 1, 0], [], []>} : vector<8x8xf32>, vector<8x8xf32>, vector<8x8xf32> -> vector<8x8xf32>
    %cst_23 = arith.constant -1.000000e+09 : f32
    %27 = vector.broadcast %cst_23 : f32 to vector<8x8xf32>
    %28 = arith.select %22, %27, %26 : vector<8x8xi1>, vector<8x8xf32>
    %cst_24 = arith.constant dense<0xFF800000> : vector<8xf32>
    %29 = vector.multi_reduction <maximumf>, %28, %cst_24 [1] : vector<8x8xf32> to vector<8xf32>
    %30 = vector.shape_cast %29 : vector<8xf32> to vector<8x1xf32>
    %31 = vector.broadcast %30 : vector<8x1xf32> to vector<8x8xf32>
    %32 = arith.subf %28, %31 : vector<8x8xf32>
    %33 = math.exp %32 : vector<8x8xf32>
    %cst_25 = arith.constant dense<0.000000e+00> : vector<8xf32>
    %34 = vector.multi_reduction <add>, %33, %cst_25 [1] : vector<8x8xf32> to vector<8xf32>
    %35 = vector.shape_cast %34 : vector<8xf32> to vector<8x1xf32>
    %36 = tpu.reciprocal %35 {approx = true} : vector<8x1xf32> -> vector<8x1xf32>
    %37 = vector.broadcast %36 : vector<8x1xf32> to vector<8x8xf32>
    %38 = arith.mulf %33, %37 : vector<8x8xf32>
    %cst_26 = arith.constant dense<0.000000e+00> : vector<8x8xf32>
    %39 = tpu.matmul %38, %25, %cst_26 {dimension_numbers = #tpu.dot_dimension_numbers<[1], [0], [0], [1], [0, 0, 1, 1], [], []>} : vector<8x8xf32>, vector<8x8xf32>, vector<8x8xf32> -> vector<8x8xf32>
    %40 = vector.extract_strided_slice %8 {offsets = [0, 8], sizes = [8, 8], strides = [1, 1]} : vector<8x32xf32> to vector<8x8xf32>
    %41 = vector.extract_strided_slice %13 {offsets = [0, 8], sizes = [8, 8], strides = [1, 1]} : vector<8x32xf32> to vector<8x8xf32>
    %42 = vector.extract_strided_slice %18 {offsets = [0, 8], sizes = [8, 8], strides = [1, 1]} : vector<8x32xf32> to vector<8x8xf32>
    %cst_27 = arith.constant dense<0.000000e+00> : vector<8x8xf32>
    %43 = tpu.matmul %40, %41, %cst_27 {dimension_numbers = #tpu.dot_dimension_numbers<[1], [1], [0], [0], [0, 0, 1, 0], [], []>} : vector<8x8xf32>, vector<8x8xf32>, vector<8x8xf32> -> vector<8x8xf32>
    %cst_28 = arith.constant -1.000000e+09 : f32
    %44 = vector.broadcast %cst_28 : f32 to vector<8x8xf32>
    %45 = arith.select %22, %44, %43 : vector<8x8xi1>, vector<8x8xf32>
    %cst_29 = arith.constant dense<0xFF800000> : vector<8xf32>
    %46 = vector.multi_reduction <maximumf>, %45, %cst_29 [1] : vector<8x8xf32> to vector<8xf32>
    %47 = vector.shape_cast %46 : vector<8xf32> to vector<8x1xf32>
    %48 = vector.broadcast %47 : vector<8x1xf32> to vector<8x8xf32>
    %49 = arith.subf %45, %48 : vector<8x8xf32>
    %50 = math.exp %49 : vector<8x8xf32>
    %cst_30 = arith.constant dense<0.000000e+00> : vector<8xf32>
    %51 = vector.multi_reduction <add>, %50, %cst_30 [1] : vector<8x8xf32> to vector<8xf32>
    %52 = vector.shape_cast %51 : vector<8xf32> to vector<8x1xf32>
    %53 = tpu.reciprocal %52 {approx = true} : vector<8x1xf32> -> vector<8x1xf32>
    %54 = vector.broadcast %53 : vector<8x1xf32> to vector<8x8xf32>
    %55 = arith.mulf %50, %54 : vector<8x8xf32>
    %cst_31 = arith.constant dense<0.000000e+00> : vector<8x8xf32>
    %56 = tpu.matmul %55, %42, %cst_31 {dimension_numbers = #tpu.dot_dimension_numbers<[1], [0], [0], [1], [0, 0, 1, 1], [], []>} : vector<8x8xf32>, vector<8x8xf32>, vector<8x8xf32> -> vector<8x8xf32>
    %57 = vector.extract_strided_slice %8 {offsets = [0, 16], sizes = [8, 8], strides = [1, 1]} : vector<8x32xf32> to vector<8x8xf32>
    %58 = vector.extract_strided_slice %13 {offsets = [0, 16], sizes = [8, 8], strides = [1, 1]} : vector<8x32xf32> to vector<8x8xf32>
    %59 = vector.extract_strided_slice %18 {offsets = [0, 16], sizes = [8, 8], strides = [1, 1]} : vector<8x32xf32> to vector<8x8xf32>
    %cst_32 = arith.constant dense<0.000000e+00> : vector<8x8xf32>
    %60 = tpu.matmul %57, %58, %cst_32 {dimension_numbers = #tpu.dot_dimension_numbers<[1], [1], [0], [0], [0, 0, 1, 0], [], []>} : vector<8x8xf32>, vector<8x8xf32>, vector<8x8xf32> -> vector<8x8xf32>
    %cst_33 = arith.constant -1.000000e+09 : f32
    %61 = vector.broadcast %cst_33 : f32 to vector<8x8xf32>
    %62 = arith.select %22, %61, %60 : vector<8x8xi1>, vector<8x8xf32>
    %cst_34 = arith.constant dense<0xFF800000> : vector<8xf32>
    %63 = vector.multi_reduction <maximumf>, %62, %cst_34 [1] : vector<8x8xf32> to vector<8xf32>
    %64 = vector.shape_cast %63 : vector<8xf32> to vector<8x1xf32>
    %65 = vector.broadcast %64 : vector<8x1xf32> to vector<8x8xf32>
    %66 = arith.subf %62, %65 : vector<8x8xf32>
    %67 = math.exp %66 : vector<8x8xf32>
    %cst_35 = arith.constant dense<0.000000e+00> : vector<8xf32>
    %68 = vector.multi_reduction <add>, %67, %cst_35 [1] : vector<8x8xf32> to vector<8xf32>
    %69 = vector.shape_cast %68 : vector<8xf32> to vector<8x1xf32>
    %70 = tpu.reciprocal %69 {approx = true} : vector<8x1xf32> -> vector<8x1xf32>
    %71 = vector.broadcast %70 : vector<8x1xf32> to vector<8x8xf32>
    %72 = arith.mulf %67, %71 : vector<8x8xf32>
    %cst_36 = arith.constant dense<0.000000e+00> : vector<8x8xf32>
    %73 = tpu.matmul %72, %59, %cst_36 {dimension_numbers = #tpu.dot_dimension_numbers<[1], [0], [0], [1], [0, 0, 1, 1], [], []>} : vector<8x8xf32>, vector<8x8xf32>, vector<8x8xf32> -> vector<8x8xf32>
    %74 = vector.extract_strided_slice %8 {offsets = [0, 24], sizes = [8, 8], strides = [1, 1]} : vector<8x32xf32> to vector<8x8xf32>
    %75 = vector.extract_strided_slice %13 {offsets = [0, 24], sizes = [8, 8], strides = [1, 1]} : vector<8x32xf32> to vector<8x8xf32>
    %76 = vector.extract_strided_slice %18 {offsets = [0, 24], sizes = [8, 8], strides = [1, 1]} : vector<8x32xf32> to vector<8x8xf32>
    %cst_37 = arith.constant dense<0.000000e+00> : vector<8x8xf32>
    %77 = tpu.matmul %74, %75, %cst_37 {dimension_numbers = #tpu.dot_dimension_numbers<[1], [1], [0], [0], [0, 0, 1, 0], [], []>} : vector<8x8xf32>, vector<8x8xf32>, vector<8x8xf32> -> vector<8x8xf32>
    %cst_38 = arith.constant -1.000000e+09 : f32
    %78 = vector.broadcast %cst_38 : f32 to vector<8x8xf32>
    %79 = arith.select %22, %78, %77 : vector<8x8xi1>, vector<8x8xf32>
    %cst_39 = arith.constant dense<0xFF800000> : vector<8xf32>
    %80 = vector.multi_reduction <maximumf>, %79, %cst_39 [1] : vector<8x8xf32> to vector<8xf32>
    %81 = vector.shape_cast %80 : vector<8xf32> to vector<8x1xf32>
    %82 = vector.broadcast %81 : vector<8x1xf32> to vector<8x8xf32>
    %83 = arith.subf %79, %82 : vector<8x8xf32>
    %84 = math.exp %83 : vector<8x8xf32>
    %cst_40 = arith.constant dense<0.000000e+00> : vector<8xf32>
    %85 = vector.multi_reduction <add>, %84, %cst_40 [1] : vector<8x8xf32> to vector<8xf32>
    %86 = vector.shape_cast %85 : vector<8xf32> to vector<8x1xf32>
    %87 = tpu.reciprocal %86 {approx = true} : vector<8x1xf32> -> vector<8x1xf32>
    %88 = vector.broadcast %87 : vector<8x1xf32> to vector<8x8xf32>
    %89 = arith.mulf %84, %88 : vector<8x8xf32>
    %cst_41 = arith.constant dense<0.000000e+00> : vector<8x8xf32>
    %90 = tpu.matmul %89, %76, %cst_41 {dimension_numbers = #tpu.dot_dimension_numbers<[1], [0], [0], [1], [0, 0, 1, 1], [], []>} : vector<8x8xf32>, vector<8x8xf32>, vector<8x8xf32> -> vector<8x8xf32>
    %91 = tpu.concatenate %39, %56, %73, %90 in 1 : vector<8x8xf32>, vector<8x8xf32>, vector<8x8xf32>, vector<8x8xf32> -> vector<8x32xf32>
    %c0_42 = arith.constant 0 : index
    %c0_43 = arith.constant 0 : index
    %c0_44 = arith.constant 0 : index
    %92 = vector.load %arg10[%c0_42, %c0_43, %c0_44] : memref<1x8x32xf32, #tpu.memory_space<vmem>>, vector<1x8x32xf32>
    %93 = vector.shape_cast %92 : vector<1x8x32xf32> to vector<8x32xf32>
    %94 = vector.shape_cast %91 : vector<8x32xf32> to vector<1x8x32xf32>
    tpu.vector_store %arg10[%c0_42, %c0_43, %c0_44], %94 {strides = array<i32>} : memref<1x8x32xf32, #tpu.memory_space<vmem>>, vector<1x8x32xf32>,
    return
  }
  func.func @transform_0(%arg0: i32) -> (i32, i32, i32) {
    %c0_i32 = arith.constant 0 : i32
    %c0_i32_0 = arith.constant 0 : i32
    %c0_i32_1 = arith.constant 0 : i32
    return %arg0, %c0_i32, %c0_i32_0 : i32, i32, i32
  }
  func.func @transform_1(%arg0: i32) -> (i32, i32, i32) {
    %c0_i32 = arith.constant 0 : i32
    %c0_i32_0 = arith.constant 0 : i32
    %c0_i32_1 = arith.constant 0 : i32
    return %arg0, %c0_i32, %c0_i32_0 : i32, i32, i32
  }
  func.func @transform_2(%arg0: i32) -> (i32, i32, i32) {
    %c0_i32 = arith.constant 0 : i32
    %c0_i32_0 = arith.constant 0 : i32
    %c0_i32_1 = arith.constant 0 : i32
    return %arg0, %c0_i32, %c0_i32_0 : i32, i32, i32
  }
  func.func @transform_3(%arg0: i32) -> (i32, i32) {
    %c0_i32 = arith.constant 0 : i32
    %c0_i32_0 = arith.constant 0 : i32
    %c0_i32_1 = arith.constant 0 : i32
    return %c0_i32, %c0_i32_0 : i32, i32
  }
  func.func @transform_4(%arg0: i32) -> (i32, i32) {
    %c0_i32 = arith.constant 0 : i32
    %c0_i32_0 = arith.constant 0 : i32
    %c0_i32_1 = arith.constant 0 : i32
    return %c0_i32, %c0_i32_0 : i32, i32
  }
  func.func @transform_5(%arg0: i32) -> (i32, i32) {
    %c0_i32 = arith.constant 0 : i32
    %c0_i32_0 = arith.constant 0 : i32
    %c0_i32_1 = arith.constant 0 : i32
    return %c0_i32, %c0_i32_0 : i32, i32
  }
  func.func @transform_6(%arg0: i32) -> (i32, i32) {
    %c0_i32 = arith.constant 0 : i32
    %c0_i32_0 = arith.constant 0 : i32
    %c0_i32_1 = arith.constant 0 : i32
    return %c0_i32, %c0_i32_0 : i32, i32
  }
  func.func @transform_7(%arg0: i32) -> (i32, i32) {
    %c0_i32 = arith.constant 0 : i32
    %c0_i32_0 = arith.constant 0 : i32
    %c0_i32_1 = arith.constant 0 : i32
    return %c0_i32, %c0_i32_0 : i32, i32
  }
  func.func @transform_8(%arg0: i32) -> (i32, i32) {
    %c0_i32 = arith.constant 0 : i32
    %c0_i32_0 = arith.constant 0 : i32
    %c0_i32_1 = arith.constant 0 : i32
    return %c0_i32, %c0_i32_0 : i32, i32
  }
  func.func @transform_9(%arg0: i32) -> (i32, i32, i32) {
    %c0_i32 = arith.constant 0 : i32
    %c0_i32_0 = arith.constant 0 : i32
    %c0_i32_1 = arith.constant 0 : i32
    return %arg0, %c0_i32, %c0_i32_0 : i32, i32, i32
  }
}

</mosaic_0001>

<bundles_post_ra>
// kernel: tpu_custom_call.1
= control target key start
LH: loop header
LB: loop body
LE: loop exit
PB: predicated region body
PF: predicated region fallthrough
CT: control target
= control target key end

     0   :  { %s2501_s0 = inlined_call_operand.hbm [shape: f32[2,8,32], index: 0, kind: input, shape index: {}]   ;;  %s2502_s1 = inlined_call_operand.hbm [shape: f32[2,8,32], index: 1, kind: input, shape index: {}]   ;;  %s2503_s2 = inlined_call_operand.hbm [shape: s8[2,8,8], index: 2, kind: input, shape index: {}]   ;;  %s2504_s3 = inlined_call_operand.hbm [shape: f32[32,32], index: 3, kind: input, shape index: {}]   ;;  %s2505_s4 = inlined_call_operand.vmem [shape: f32[1,32], index: 4, kind: input, shape index: {}]   ;;  %s2506_s5 = inlined_call_operand.hbm [shape: f32[32,32], index: 5, kind: input, shape index: {}]   ;;  %s2507_s6 = inlined_call_operand.vmem [shape: f32[1,32], index: 6, kind: input, shape index: {}]   ;;  %s2508_s7 = inlined_call_operand.hbm [shape: f32[32,32], index: 7, kind: input, shape index: {}]   ;;  %s2509_s8 = inlined_call_operand.vmem [shape: f32[1,32], index: 8, kind: input, shape index: {}]   ;;  %s2510_s9 = inlined_call_operand.hbm [shape: f32[2,8,32], index: 9, kind: output, shape index: {}]  }
   0x1   :  { %2530 = sst [smem:[#allocation24_spill]] %s2501_s0 }
   0x2   :  { %2531 = sst [smem:[#allocation25_spill]] %s2502_s1 }
   0x3   :  { %2532 = sst [smem:[#allocation26_spill]] %s2504_s3 }
   0x4   :  { %2533 = sst [smem:[#allocation27_spill]] %s2510_s9 }
   0x5   :  { %14 = vsyncpa [#allocation3], 0 }
   0x6   :  { %16 = vsyncpa [#allocation3 + $0x1], 0 }
   0x7   :  { %17 = vsyncpa [#allocation6], 0 }
   0x8   :  { %19 = vsyncpa [#allocation6 + $0x1], 0 }
   0x9   :  { %20 = vsyncpa [#allocation9], 0 }
   0xa   :  { %21 = vsyncpa [#allocation12], 0 }
   0xb   :  { %22 = vsyncpa [#allocation4], 0 }
   0xc   :  { %24 = vsyncpa [#allocation4 + $0x1], 0  ;;  %s2125_s30 = smov 0   ;;  %s2127_s10 = smov 0  }
   0xd   :  { %s2129_s11 = smov 0   ;;  %s2131_s12 = smov 0  }
   0xe LB: > { %2534 = sst [smem:[#allocation19_spill]] %s2043_s30  ;;  %s2146_s13 = sadd.s32 4294967295, %s2055_s12   ;;  %s2055_s12 = sphi %s2131_s12, %s2570_s12   ;;  %s2051_s11 = sphi %s2129_s11, %s2575_s11   ;;  %s2047_s10 = sphi %s2127_s10, %s2574_s10   ;;  %s2043_s30 = sphi %s2125_s30, %s2573_s30  }
   0xf   : > { %2535 = sst [smem:[#allocation20_spill]] %s2051_s11  ;;  %s1557_s14 = sadd.s32 4294967294, %s2055_s12  }
  0x10   : > { %p50_p0 = scmp.ne.s32.totalorder %s2047_s10, %s2043_s30  ;;  %p2520_p1 = scmp.eq.s32.totalorder %s2146_s13, 0 }
  0x11   : > { %p252_p2 = scmp.eq.s32.totalorder %s2146_s13, 1  ;;  %p258_p3 = scmp.eq.s32.totalorder %s1557_s14, 1 }
  0x12   : > { %p2155_p4 = por %p2520_p1, %p50_p0  ;;  %p1558_p5 = scmp.ge.s32.totalorder %s2055_s12, 1 }
  0x13   : > { %p2160_p6 = por %p258_p3, %p50_p0  ;;  %p265_p7 = scmp.lt.s32.totalorder %s2055_s12, 3 }
  0x14   : > { %s2536_s15 = scalar_select %p2155_p4, 1, 0 }
  0x15   : > { %s2537_s16 = scalar_select %p2160_p6, 1, 0 }
  0x16   : > { %p2165_p8 = pnand %p1558_p5, %p265_p7  ;;  %s2057_s18 = smov [#allocation8]  }
  0x17   : > { %2538 = sst [smem:[#allocation21_spill]] %s2537_s16  ;;  %s277_s19 = sshll.u32 %s2057_s18, 4  ;;  %s278_s19 = int_to_ptr.vmem [resolvable:$true] %s277_s19 }
  0x18   : > { %s2539_s17 = scalar_select %p2165_p8, 1, 0 }
  0x19   : > { %p1723_p9 = pneg %p2165_p8  ;;  %s2179_s21 = sadd.s32 1, %s2055_s12  }
  0x1a   : > { %2541 = sst [smem:[#allocation22_spill]] %s2179_s21  ;;  %s37_s22 = sadd.s32 1, %s2051_s11 }
  0x1b   : > { %p2174_p11 = pnand %p1723_p9, %p2520_p1  ;;  %s34_s23 = ssub.s32 %s2055_s12, %s2179_s21 }
  0x1c   : > { %s1828_s24 = scalar_lea.vmem %s278_s19, 512  ;;  %p1836_p5 = scmp.lt.s32.totalorder %s278_s19, %s278_s19 }
  0x1d   : > { %s2540_s20 = scalar_select %p2174_p11, 1, 0 }
  0x1e   : > { %p2521_p12 = pneg %p2174_p11  ;;  %p1829_p13 = scmp.ne.s32.totalorder %s278_s19, %s1828_s24 }
  0x1f   : > { %p1837_p7 = scmp.lt.s32.totalorder %s1828_s24, %s1828_s24 }
  0x20   : > { %p1831_p0 = pnand %p1829_p13, %p2521_p12 }
  0x21   : > { %p1838_p9 = por %p1837_p7, %p1836_p5 }
  0x22   : > { %p1832_p3 = pneg %p1831_p0 }
  0x24   : > { %p1839_p10 = pnand %p1838_p9, %p1832_p3 }
  0x26   : > { %1842 = shalt.err (!%p1839_p10)
}
  0x27   : > { %s2513_s25 = smov 128   ;;  %s2515_s26 = smov 8  }
  0x28   : > { %s2542_s3 = sld [smem:[#allocation26_spill]]  ;;  %p35_p10 = scmp.eq.s32.totalorder %s34_s23, 0 }
  0x29   : > { %p44_p13 = scmp.ne.s32.totalorder %s2051_s11, %s2047_s10  ;;  %p45_p0 = scmp.eq.s32.totalorder %s2055_s12, 0 }
  0x2a   : > { %p1750_p3 = scmp.lt.s32.totalorder %s2055_s12, 2  ;;  %s2211_s18 = sand.u32 1, %s2051_s11  }
  0x2b   : > { %s2202_s29 = scalar_select %p35_p10, %s2051_s11, %s37_s22  }
  0x2c   : > { %p46_p5 = por %p45_p0, %p44_p13  ;;  %p2206_p7 = por %p252_p2, %p44_p13 }
  0x2d   : > { %2543 = sst [smem:[#allocation23_spill]] %s2202_s29  ;;  %s2518_s24 = sshll.u32 %s2055_s12, 7 }
  0x2e   : > { %1726 = dma.hbm_to_vmem [thread:$0]  (!%p2174_p11), %s2542_s3, 512, %s278_s19, [#allocation9], %s2513_s25, %s2513_s25, %s2515_s26  }
  0x2f   : > { %s2544_s14 = scalar_select %p2206_p7, 1, 0 }
  0x30   : > { %s2519_s21 = sshll.u32 %s2211_s18, 3  ;;  %p2215_p9 = pnand %p1750_p3, %p46_p5 }
  0x31   : > { %s344_s23 = sand.u32 1, %s2055_s12   ;;  %s2546_s1 = sld [smem:[#allocation25_spill]] }
  0x32   : > { %s348_s25 = scalar_lea.vmem [#allocation5], %s2519_s21  ;;  %s2229_s3 = scalar_lea.sflag [#allocation6], %s344_s23 }
  0x33   : > { %s355_s26 = sshll.u32 %s348_s25, 4  ;;  %p2235_p10 = pneg %p2215_p9  ;;  %s356_s26 = int_to_ptr.vmem [resolvable:$true] %s355_s26 }
  0x37   : > { %s2225_s28 = scalar_lea.hbm %s2546_s1, %s2518_s24  ;;  %s1848_s24 = scalar_lea.hbm %s2546_s1, 256 }
  0x38   : > { %s1843_s29 = scalar_lea.hbm %s2225_s28, 128  ;;  %p1849_p3 = scmp.lt.s32.totalorder %s2225_s28, %s2546_s1 }
  0x39   : > { %p1844_p2 = scmp.ne.s32.totalorder %s2225_s28, %s1843_s29  ;;  %p1850_p5 = scmp.lt.s32.totalorder %s1848_s24, %s1843_s29 }
  0x3b   : > { %p1846_p13 = pnand %p2235_p10, %p1844_p2  ;;  %p1851_p1 = por %p1850_p5, %p1849_p3 }
  0x3d   : > { %p1847_p0 = pneg %p1846_p13 }
  0x3f   : > { %p1852_p12 = pnand %p1851_p1, %p1847_p0 }
  0x41   : > { %1855 = shalt.err (!%p1852_p12)
}
  0x42   : > { %s1856_s23 = scalar_lea.vmem %s356_s26, 128  ;;  %s2060_s16 = smov [#allocation5]  }
  0x43   : > { %p1857_p6 = scmp.ne.s32.totalorder %s356_s26, %s1856_s23  ;;  %s1861_s30 = sshll.u32 %s2060_s16, 4  ;;  %s1862_s30 = int_to_ptr.vmem [resolvable:$false] %s1861_s30 }
  0x44   : > { %s1863_s9 = scalar_lea.vmem %s1862_s30, 256  ;;  %p1864_p2 = scmp.lt.s32.totalorder %s356_s26, %s1862_s30 }
  0x45   : > { %p1859_p7 = pnand %p1857_p6, %p2235_p10  ;;  %p1865_p13 = scmp.lt.s32.totalorder %s1863_s9, %s1856_s23 }
  0x47   : > { %p1860_p4 = pneg %p1859_p7  ;;  %p1866_p8 = por %p1865_p13, %p1864_p2 }
  0x49   : > { %p1867_p11 = pnand %p1866_p8, %p1860_p4 }
  0x4b   : > { %1870 = shalt.err (!%p1867_p11)
}
  0x4c   : > { %1739 = dma.hbm_to_vmem [thread:$0]  (!%p2215_p9), %s2225_s28, 128, %s356_s26, %s2229_s3  }
  0x4d   : > { %s2061_s21 = smov [#allocation10]   ;;  %s2062_s24 = smov [#allocation11]  }
  0x4e   : > { %s293_s29 = sshll.u32 %s2061_s21, 4  ;;  %s309_s22 = sshll.u32 %s2062_s24, 4  ;;  %s294_s29 = int_to_ptr.vmem [resolvable:$true] %s293_s29  ;;  %s310_s22 = int_to_ptr.vmem [resolvable:$true] %s309_s22 }
  0x4f   : > { %s1882_s27 = scalar_lea.vmem %s294_s29, 512  ;;  %p2548_p6 = scmp.ne.s32.totalorder %s2540_s20, 0 }
  0x50   : > { %p1883_p1 = scmp.ne.s32.totalorder %s294_s29, %s1882_s27  ;;  %p1890_p3 = scmp.lt.s32.totalorder %s294_s29, %s294_s29 }
  0x51   : > { %p2549_p12 = pneg %p2548_p6  ;;  %p1891_p4 = scmp.lt.s32.totalorder %s1882_s27, %s1882_s27 }
  0x53   : > { %p1885_p7 = pnand %p1883_p1, %p2549_p12  ;;  %p1892_p8 = por %p1891_p4, %p1890_p3 }
  0x55   : > { %p1886_p0 = pneg %p1885_p7 }
  0x57   : > { %p1893_p11 = pnand %p1892_p8, %p1886_p0 }
  0x59   : > { %1896 = shalt.err (!%p1893_p11)
}
  0x5a   : > { %s2550_s9 = smov 8   ;;  %s2551_s30 = smov 128  }
  0x5b   : > { %1729 = dma.hbm_to_vmem [thread:$0]  (!%p2548_p6), %s2506_s5, 512, %s294_s29, [#allocation9], %s2551_s30, %s2551_s30, %s2550_s9  }
  0x5c   : > { %s1908_s28 = scalar_lea.vmem %s310_s22, 512  ;;  %p2552_p2 = pmov %p2549_p12 }
  0x5d   : > { %p1909_p5 = scmp.ne.s32.totalorder %s310_s22, %s1908_s28  ;;  %p1916_p12 = scmp.lt.s32.totalorder %s310_s22, %s310_s22 }
  0x5e   : > { %p1917_p7 = scmp.lt.s32.totalorder %s1908_s28, %s1908_s28 }
  0x5f   : > { %p1911_p13 = pnand %p1909_p5, %p2552_p2 }
  0x60   : > { %p1918_p0 = por %p1917_p7, %p1916_p12 }
  0x61   : > { %p1912_p1 = pneg %p1911_p13 }
  0x63   : > { %p1919_p3 = pnand %p1918_p0, %p1912_p1 }
  0x65   : > { %1922 = shalt.err (!%p1919_p3)
}
  0x66   : > { %1732 = dma.hbm_to_vmem [thread:$0]  (!%p2548_p6), %s2508_s7, 512, %s310_s22, [#allocation12], %s2551_s30, %s2551_s30, %s2550_s9  }
  0x67   : > { %s2553_s21 = sshll.u32 %s2055_s12, 7  ;;  %s2554_s0 = sld [smem:[#allocation24_spill]] }
  0x68   : > { %s2555_s16 = sshll.u32 %s2211_s18, 3  ;;  %s1567_s28 = sshll.u32 %s2211_s18, 1 }
  0x69   : > { %s330_s20 = scalar_lea.vmem [#allocation2], %s2555_s16  ;;  %s327_s25 = scalar_lea.sflag [#allocation3], %s2211_s18 }
  0x6a   : > { %s337_s26 = sshll.u32 %s330_s20, 4  ;;  %s338_s26 = int_to_ptr.vmem [resolvable:$true] %s337_s26 }
  0x6d   : > { %s2281_s27 = scalar_lea.hbm %s2554_s0, %s2553_s21  ;;  %s1928_s30 = scalar_lea.hbm %s2554_s0, 256 }
  0x6e   : > { %s1923_s23 = scalar_lea.hbm %s2281_s27, 128  ;;  %p1929_p11 = scmp.lt.s32.totalorder %s2281_s27, %s2554_s0 }
  0x6f   : > { %p1924_p4 = scmp.ne.s32.totalorder %s2281_s27, %s1923_s23  ;;  %p1930_p5 = scmp.lt.s32.totalorder %s1928_s30, %s1923_s23 }
  0x71   : > { %p1926_p8 = pnand %p1924_p4, %p2235_p10  ;;  %p1931_p2 = por %p1930_p5, %p1929_p11 }
  0x73   : > { %p1927_p6 = pneg %p1926_p8 }
  0x75   : > { %p1932_p13 = pnand %p1931_p2, %p1927_p6 }
  0x77   : > { %1935 = shalt.err (!%p1932_p13)
}
  0x78   : > { %s1936_s24 = scalar_lea.vmem %s338_s26, 128  ;;  %s2063_s18 = smov [#allocation2]  }
  0x79   : > { %p1937_p1 = scmp.ne.s32.totalorder %s338_s26, %s1936_s24  ;;  %s1941_s16 = sshll.u32 %s2063_s18, 4  ;;  %s1942_s16 = int_to_ptr.vmem [resolvable:$false] %s1941_s16 }
  0x7a   : > { %s1943_s20 = scalar_lea.vmem %s1942_s16, 256  ;;  %p1944_p0 = scmp.lt.s32.totalorder %s338_s26, %s1942_s16 }
  0x7b   : > { %p1939_p12 = pnand %p1937_p1, %p2235_p10  ;;  %p1945_p3 = scmp.lt.s32.totalorder %s1943_s20, %s1936_s24 }
  0x7d   : > { %p1940_p7 = pneg %p1939_p12  ;;  %p1946_p4 = por %p1945_p3, %p1944_p0 }
  0x7f   : > { %p1947_p8 = pnand %p1946_p4, %p1940_p7 }
  0x81   : > { %1950 = shalt.err (!%p1947_p8)
}
  0x82   : > { %1736 = dma.hbm_to_vmem [thread:$0]  (!%p2215_p9), %s2281_s27, 128, %s338_s26, %s327_s25  }
  0x83   : > { %s1568_s23 = sshll.u32 %s2055_s12, 5  ;;  %s366_s22 = scalar_lea.vmem [#allocation7], %s1567_s28 }
  0x84   : > { %s373_s9 = sshll.u32 %s366_s22, 4  ;;  %s371_s29 = scalar_lea.hbm %s2503_s2, %s1568_s23  ;;  %s374_s9 = int_to_ptr.vmem [resolvable:$true] %s373_s9 }
  0x85   : > { %s1951_s18 = scalar_lea.hbm %s371_s29, 32  ;;  %s1956_s20 = scalar_lea.hbm %s2503_s2, 64 }
  0x86   : > { %p1952_p6 = scmp.ne.s32.totalorder %s371_s29, %s1951_s18  ;;  %p1957_p2 = scmp.lt.s32.totalorder %s371_s29, %s2503_s2 }
  0x87   : > { %p1958_p13 = scmp.lt.s32.totalorder %s1956_s20, %s1951_s18 }
  0x88   : > { %p1954_p11 = pnand %p1952_p6, %p2235_p10 }
  0x89   : > { %p1959_p1 = por %p1958_p13, %p1957_p2 }
  0x8a   : > { %p1955_p5 = pneg %p1954_p11 }
  0x8c   : > { %p1960_p12 = pnand %p1959_p1, %p1955_p5 }
  0x8e   : > { %1963 = shalt.err (!%p1960_p12)
}
  0x8f   : > { %s1964_s27 = scalar_lea.vmem %s374_s9, 32  ;;  %s2064_s26 = smov [#allocation7]  }
  0x90   : > { %p1965_p7 = scmp.ne.s32.totalorder %s374_s9, %s1964_s27  ;;  %s1969_s28 = sshll.u32 %s2064_s26, 4  ;;  %s1970_s28 = int_to_ptr.vmem [resolvable:$false] %s1969_s28 }
  0x91   : > { %s1971_s25 = scalar_lea.vmem %s1970_s28, 64  ;;  %p1972_p4 = scmp.lt.s32.totalorder %s374_s9, %s1970_s28 }
  0x92   : > { %p1967_p0 = pnand %p1965_p7, %p2235_p10  ;;  %p1973_p8 = scmp.lt.s32.totalorder %s1971_s25, %s1964_s27 }
  0x94   : > { %p1968_p3 = pneg %p1967_p0  ;;  %p1974_p6 = por %p1973_p8, %p1972_p4 }
  0x96   : > { %p1975_p11 = pnand %p1974_p6, %p1968_p3 }
  0x98   : > { %1978 = shalt.err (!%p1975_p11)
}
  0x99   : > { %1742 = dma.hbm_to_vmem [thread:$0]  (!%p2215_p9), %s371_s29, 32, %s374_s9, %s2229_s3  }
  0x9a   : > { %p2556_p5 = scmp.ne.s32.totalorder %s2539_s17, 0 }
  0x9b   : > { %s2323_s0 = sand.u32 (!%p2556_p5), 1, %s2047_s10   ;;  %p2557_p10 = scmp.ne.s32.totalorder (!%p2556_p5), %s2536_s15, 0 }
  0x9c   : > { %382 = sbr.rel (%p2556_p5) target bundleno = 1333 (0x535), region = 56  ;;  %s2326_s1 = sshll.u32 (!%p2556_p5), %s2323_s0, 3 }
  0x9d   : > { %s385_s11 = scalar_lea.sflag (!%p2556_p5), [#allocation3], %s2323_s0  ;;  %s388_s23 = scalar_lea.vmem (!%p2556_p5), [#allocation2], %s2326_s1 }
  0xa1   : > { %2022 = dma.done.wait (%p2557_p10), %s385_s11, 128  }
  0xa2   : > { %2024 = vsyncadd (%p2557_p10), %s385_s11, 4294967168  ;;  %s393_s3 = sand.u32 1, %s2146_s13   ;;  %s397_s19 = scalar_lea.vmem [#allocation5], %s2326_s1 }
  0xa3   : > { %s394_s17 = scalar_lea.sflag [#allocation6], %s393_s3 }
  0xa4   : > { %2026 = dma.done.wait (%p2557_p10), %s394_s17, 160  }
  0xa5   : > { %2028 = vsyncadd (%p2557_p10), %s394_s17, 4294967136  ;;  %s1572_s22 = sshll.u32 %s2323_s0, 1  ;;  %p2558_p9 = scmp.eq.s32.totalorder %s2146_s13, 0 }
  0xa6   : > { %s2341_s9 = scalar_lea.vmem [#allocation7], %s1572_s22 }
  0xa7   : > { %2030 = dma.done.wait (%p2558_p9), [#allocation9], 1024   ;;  %p2559_p2 = pmov %p2558_p9 }
  0xa9   : > { %2032 = vsyncadd (%p2559_p2), [#allocation9], 4294966272  ;;  %p2560_p13 = pmov %p2559_p2 }
  0xaa   : > { %p2561_p1 = pmov %p2559_p2 }
  0xab   : > { %2034 = dma.done.wait (%p2560_p13), [#allocation12], 512  }
  0xac   : > { %2036 = vsyncadd (%p2561_p1), [#allocation12], 4294966784  ;;  %v2065_v0 = vmov 0.0   ;;  %vm2066_vm0 = vmmov 0   ;;  %v555_v1 = vld [vmem:[#allocation10 + $0x18] sm:$0xff]  ;;  %v554_v3 = vld [vmem:[#allocation10 + $0x10] sm:$0xff] }
  0xad   : > { %1641 = vmatprep.subr.mxu1 %v2065_v0  ;;  %1630 = vmatprep.subr.mxu0 %v2065_v0  ;;  %v470_v2 = vld [vmem:[#allocation8 + $0x18] sm:$0xff]  ;;  %v469_v4 = vld [vmem:[#allocation8 + $0x10] sm:$0xff]  ;;  %v553_v5 = vld [vmem:[#allocation10 + $0x8] sm:$0xff]  ;;  %vm478_vm1 = vcmask 261120   ;;  %vm719_vm2 = vcmask 64512   ;;  %s2067_s18 = smov 112  }
  0xae   : > { %1649 = vmatprep.mubr.msk.f32.mxu1 %vm2066_vm0, %v2065_v0  ;;  %1638 = vmatprep.mubr.msk.f32.mxu0 %vm2066_vm0, %v2065_v0  ;;  %v468_v6 = vld [vmem:[#allocation8 + $0x8] sm:$0xff]  ;;  %v552_v7 = vld [vmem:[#allocation10] sm:$0xff]  ;;  %v639_v11 = vld [vmem:[#allocation11 + $0x18] sm:$0xff]  ;;  %s2068_s24 = smov 120   ;;  %s2069_s16 = smov 104   ;;  %v2070_v34 = vmov 0  }
  0xaf   : > { %1642 = vmatpush3.msra.mxu1 %v555_v1  ;;  %1631 = vmatpush3.msra.mxu0 %v470_v2  ;;  %v467_v8 = vld [vmem:[#allocation8] sm:$0xff]  ;;  %v466_v9 = vld [vmem:[%s397_s19] sm:$0xff]  ;;  %v1579_v15 = vld [vmem:[%s2507_s6] ss:$0 sm:$0xff]  ;;  %s2071_s26 = smov 8   ;;  %s2072_s28 = smov 16  }
  0xb0   : > { %1643 = vmatprep.subr.mxu1 %v2065_v0  ;;  %1632 = vmatprep.subr.mxu0 %v2065_v0  ;;  %v465_v10 = vld [vmem:[%s388_s23] sm:$0xff]  ;;  %v638_v12 = vld [vmem:[#allocation11 + $0x10] sm:$0xff]  ;;  %s2073_s25 = smov 24   ;;  %vm1396_vm5 = vcmask 130048   ;;  %s1596_s11 = sshll.u32 %s2146_s13, 7  ;;  %vm1398_vm6 = vcmask 195584  }
  0xb1   : > { %1644 = vmatpush3.msra.mxu1 %v554_v3  ;;  %1633 = vmatpush3.msra.mxu0 %v469_v4  ;;  %v637_v13 = vld [vmem:[#allocation11 + $0x8] sm:$0xff]  ;;  %v636_v14 = vld [vmem:[#allocation11] sm:$0xff]  ;;  %v1577_v17 = vld [vmem:[%s2505_s4] ss:$0 sm:$0xff]  ;;  %s462_s23 = scalar_lea.vmem [#allocation13], %s2326_s1  ;;  %s2564_s22 = sld [smem:[#allocation27_spill]] }
  0xb2   : > { %1645 = vmatprep.subr.mxu1 %v2065_v0  ;;  %1634 = vmatprep.subr.mxu0 %v2065_v0  ;;  %v1581_v23 = vld [vmem:[%s2509_s8] ss:$0 sm:$0xff]  ;;  %s1415_s3 = sshll.u32 %s462_s23, 4  ;;  %s1402_s15 = scalar_lea.sflag [#allocation4], %s2323_s0  ;;  %s1416_s3 = int_to_ptr.vmem [resolvable:$true] %s1415_s3 }
  0xb3   : > { %1646 = vmatpush3.msra.mxu1 %v553_v5  ;;  %1635 = vmatpush3.msra.mxu0 %v468_v6  ;;  %v717_v33 = vld [vmem:[%s2341_s9] sm:$0x3]  ;;  %s1979_s30 = scalar_lea.vmem %s1416_s3, 128  ;;  %p2565_p7 = scmp.ne.s32.totalorder %s2544_s14, 0 }
  0xb4   : > { %1647 = vmatprep.subr.mxu1 %v2065_v0  ;;  %1636 = vmatprep.subr.mxu0 %v2065_v0  ;;  %vm718_vm3 = vnez %v717_v33  ;;  %p1980_p12 = scmp.ne.s32.totalorder %s1416_s3, %s1979_s30  ;;  %s2074_s13 = smov [#allocation13]  }
  0xb5   : > { %1648 = vmatpush3.msra.mxu1 %v552_v7  ;;  %1637 = vmatpush3.msra.mxu0 %v467_v8  ;;  %v796_v35 = vsel %vm718_vm3, 16843009, %v2070_v34  ;;  %s1983_s1 = sshll.u32 %s2074_s13, 4  ;;  %s1984_s1 = int_to_ptr.vmem [resolvable:$false] %s1983_s1 }
  0xb6   : > { %1650 = vmatmul.mubr.msk.f32.vlgmr.msra.gmra.mxu1 %vm478_vm1, %v466_v9  ;;  %1639 = vmatmul.mubr.msk.f32.vlgmr.msra.gmra.mxu0 %vm478_vm1, %v465_v10  ;;  %v797_v36 = vunpack.c.0.s8 %v796_v35  ;;  %p1981_p0 = pnand %p1980_p12, %p2565_p7  ;;  %s1985_s21 = scalar_lea.vmem %s1984_s1, 256 }
  0xb7   : > { %1663 = vmatprep.subr.mxu1 %v2065_v0  ;;  %1665 = vmatprep.mubr.msk.f32.mxu1 %vm2066_vm0, %v2065_v0  ;;  %s2463_s9 = scalar_lea.hbm %s2564_s22, %s1596_s11  ;;  %p1986_p4 = scmp.lt.s32.totalorder %s1416_s3, %s1984_s1 }
  0xb8   : > { %1652 = vmatprep.subr.mxu0 %v2065_v0  ;;  %1660 = vmatprep.mubr.msk.f32.mxu0 %vm2066_vm0, %v2065_v0  ;;  %vm2419_vm4 = vcmp.ne.s32.totalorder %v797_v36, 0  ;;  %p1982_p3 = pneg %p1981_p0  ;;  %p1987_p8 = scmp.lt.s32.totalorder %s1985_s21, %s1979_s30 }
  0xb9   : > { %1653 = vmatpush3.msra.mxu0 %v639_v11 }
  0xba   : > { %1654 = vmatprep.subr.mxu0 %v2065_v0  ;;  %p1988_p6 = por %p1987_p8, %p1986_p4 }
  0xbb   : > { %1655 = vmatpush3.msra.mxu0 %v638_v12 }
  0xbc   : > { %1656 = vmatprep.subr.mxu0 %v2065_v0  ;;  %p1989_p11 = pnand %p1988_p6, %p1982_p3 }
  0xbd   : > { %1657 = vmatpush3.msra.mxu0 %v637_v13 }
  0xbe   : > { %1658 = vmatprep.subr.mxu0 %v2065_v0 }
  0xbf   : > { %1659 = vmatpush3.msra.mxu0 %v636_v14 }
  0xc0   : > { %1661 = vmatmul.mubr.msk.f32.vlgmr.msra.gmra.mxu0 %vm478_vm1, %v466_v9  ;;  %1673 = vmatprep.subr.mxu0 %v2065_v0 }
  0xc1   : > { %1675 = vmatprep.mubr.msk.f32.mxu0 %vm2066_vm0, %v2065_v0 }
 0x176   : > { %v632_v16 = vpop.f32.mrf.mxu1  ;;  %v548_v18 = vpop.f32.mrf.mxu0 }
 0x177   : > { %v633_v19 = vadd.f32 %v1579_v15, %v632_v16  ;;  %v549_v22 = vadd.f32 %v1577_v17, %v548_v18 }
 0x178   : > { %v1651_v20 = vpop.f32.mrf.mxu1  ;;  %v1640_v21 = vpop.f32.mrf.mxu0 }
 0x179   : > { %1053 = vrot.lane.b32.xlu1 %v633_v19, %s2067_s18  ;;  %886 = vrot.lane.b32.xlu0 %v633_v19, %s2068_s24 }
 0x17a   : > { %1664 = vmatpush3.xpose.msk.msra.mxu1 %vm719_vm2, %v633_v19 }
 0x17b   : > { %1668 = vmatprep.subr.mxu1 %v2065_v0 }
 0x17d   : > { %1666 = vmatmul.mubr.msk.f32.vlgmr.msra.gmra.mxu1 %vm719_vm2, %v549_v22  ;;  %1051 = vrot.lane.b32.xlu1 %v549_v22, %s2067_s18 }
 0x17e   : > { %884 = vrot.lane.b32.xlu0 %v549_v22, %s2068_s24  ;;  %1670 = vmatprep.mubr.msk.f32.mxu1 %vm2066_vm0, %v2065_v0 }
 0x180   : > { %v713_v24 = vpop.f32.mrf.mxu0 }
 0x181   : > { %1217 = vrot.lane.b32.xlu1 %v549_v22, %s2069_s16  ;;  %v2402_v25 = vadd.f32 %v1581_v23, %v713_v24 }
 0x182   : > { %1219 = vrot.lane.b32.xlu0 %v633_v19, %s2069_s16  ;;  %v1662_v26 = vpop.f32.mrf.mxu0 }
 0x183   : > { %1669 = vmatpush3.msra.mxu1 %v2402_v25 }
 0x184   : > { %1678 = vmatprep.subr.mxu1 %v2065_v0 }
 0x1eb   : > { %v887_v27 = vpop.permute.xlu0 %886  ;;  %v1054_v28 = vpop.permute.xlu1 %1053 }
 0x1ec   : > { %1674 = vmatpush3.xpose.msk.msra.mxu0 %vm719_vm2, %v887_v27 }
 0x1ed   : > { %1683 = vmatprep.subr.mxu0 %v2065_v0 }
 0x1ef   : > { %v1052_v30 = vpop.permute.xlu1 %1051 }
 0x1f0   : > { %v885_v29 = vpop.permute.xlu0 %884 }
 0x1f1   : > { %1676 = vmatmul.mubr.msk.f32.vlgmr.msra.gmra.mxu0 %vm719_vm2, %v885_v29 }
 0x1f2   : > { %1684 = vmatpush3.xpose.msk.msra.mxu0 %vm719_vm2, %v1054_v28  ;;  %1685 = vmatprep.mubr.msk.f32.mxu0 %vm2066_vm0, %v2065_v0 }
 0x1f3   : > { %1693 = vmatprep.subr.mxu0 %v2065_v0  ;;  %v1218_v32 = vpop.permute.xlu1 %1217 }
 0x1f4   : > { %v1220_v31 = vpop.permute.xlu0 %1219 }
 0x1f5   : > { %1686 = vmatmul.mubr.msk.f32.vlgmr.msra.gmra.mxu0 %vm719_vm2, %v1052_v30 }
 0x1f6   : > { %1694 = vmatpush3.xpose.msk.msra.mxu0 %vm719_vm2, %v1220_v31  ;;  %1695 = vmatprep.mubr.msk.f32.mxu0 %vm2066_vm0, %v2065_v0 }
 0x1f9   : > { %1696 = vmatmul.mubr.msk.f32.vlgmr.msra.gmra.mxu0 %vm719_vm2, %v1218_v32 }
 0x23d   : > { %v792_v38 = vpop.f32.mrf.mxu1 }
 0x23e   : > { %v799_v39 = vsel %vm2419_vm4, -1e+09, %v792_v38 }
 0x23f   : > { %v1667_v40 = vpop.f32.mrf.mxu1  ;;  %v800_v41 = vsel %vm719_vm2, %v799_v39, -inf }
 0x240   : > { %801 = vmax.xlane.f32.xlu0 %v800_v41 }
 0x2b1   : > { %v958_v42 = vpop.f32.mrf.mxu0 }
 0x2b2   : > { %v962_v43 = vsel %vm2419_vm4, -1e+09, %v958_v42 }
 0x2b3   : > { %v1677_v44 = vpop.f32.mrf.mxu0  ;;  %v963_v45 = vsel %vm719_vm2, %v962_v43, -inf }
 0x2b4   : > { %964 = vmax.xlane.f32.xlu1 %v963_v45 }
 0x2b5   : > { %v1125_v46 = vpop.f32.mrf.mxu0 }
 0x2b6   : > { %v1129_v47 = vsel %vm2419_vm4, -1e+09, %v1125_v46 }
 0x2b7   : > { %v1687_v48 = vpop.f32.mrf.mxu0  ;;  %v1130_v49 = vsel %vm719_vm2, %v1129_v47, -inf }
 0x2b8   : > { %1131 = vmax.xlane.f32.xlu0 %v1130_v49 }
 0x2b9   : > { %v1291_v50 = vpop.f32.mrf.mxu0 }
 0x2ba   : > { %v1295_v51 = vsel %vm2419_vm4, -1e+09, %v1291_v50 }
 0x2bb   : > { %v1697_v52 = vpop.f32.mrf.mxu0  ;;  %v1296_v53 = vsel %vm719_vm2, %v1295_v51, -inf }
 0x2bc   : > { %1297 = vmax.xlane.f32.xlu0 %v1296_v53 }
 0x2c5   : > { %975 = vrot.lane.b32.xlu1 %v2402_v25, %s2068_s24 }
 0x2c9   : > { %v802_v54 = vpop.xlane.xlu0 %801 }
 0x2ca   : > { %v803_v55 = vsub.f32 %v799_v39, %v802_v54 }
 0x2cc   : > { %v804_v56 = vmul.f32 1.442695, %v803_v55 }
 0x2ce   : > { %1801 = vpow2.f32 %v804_v56 }
 0x2db   : > { %v1802_v57 = vpop.eup %1801 }
 0x2dc   : > { %v806_v58 = vsel %vm719_vm2, %v1802_v57, 0.0 }
 0x2e9   : > { %807 = vadd.xlane.f32.xlu1 %v806_v58 }
 0x33d   : > { %v965_v59 = vpop.xlane.xlu1 %964 }
 0x33e   : > { %v966_v60 = vsub.f32 %v962_v43, %v965_v59 }
 0x340   : > { %v967_v61 = vmul.f32 1.442695, %v966_v60 }
 0x341   : > { %v1132_v62 = vpop.xlane.xlu0 %1131  ;;  %v976_v11 = vpop.permute.xlu1 %975 }
 0x342   : > { %1803 = vpow2.f32 %v967_v61  ;;  %v1133_v63 = vsub.f32 %v1129_v47, %v1132_v62 }
 0x344   : > { %v1134_v1 = vmul.f32 1.442695, %v1133_v63 }
 0x345   : > { %v1298_v2 = vpop.xlane.xlu0 %1297 }
 0x346   : > { %1805 = vpow2.f32 %v1134_v1  ;;  %v1299_v3 = vsub.f32 %v1295_v51, %v1298_v2 }
 0x348   : > { %v1300_v4 = vmul.f32 1.442695, %v1299_v3 }
 0x34a   : > { %1807 = vpow2.f32 %v1300_v4 }
 0x34f   : > { %v1804_v5 = vpop.eup %1803 }
 0x350   : > { %v969_v6 = vsel %vm719_vm2, %v1804_v5, 0.0 }
 0x351   : > { %970 = vadd.xlane.f32.xlu0 %v969_v6 }
 0x353   : > { %v1806_v7 = vpop.eup %1805 }
 0x354   : > { %v1136_v8 = vsel %vm719_vm2, %v1806_v7, 0.0 }
 0x355   : > { %1137 = vadd.xlane.f32.xlu1 %v1136_v8 }
 0x357   : > { %v1808_v9 = vpop.eup %1807 }
 0x358   : > { %v1302_v10 = vsel %vm719_vm2, %v1808_v9, 0.0 }
 0x359   : > { %1303 = vadd.xlane.f32.xlu0 %v1302_v10 }
 0x366   : > { %1307 = vrot.lane.b32.xlu1 %v2402_v25, %s2069_s16 }
 0x36f   : > { %1141 = vrot.lane.b32.xlu0 %v2402_v25, %s2067_s18 }
 0x372   : > { %v808_v12 = vpop.xlane.xlu1 %807 }
 0x373   : > { %1809 = vrcp.f32 %v808_v12 }
 0x380   : > { %v1810_v13 = vpop.eup %1809 }
 0x381   : > { %v810_v14 = vmul.f32 %v1810_v13, %v1802_v57 }
 0x383   : > { %1671 = vmatmul.mubr.msk.f32.vlgmr.msra.gmra.mxu1 %vm719_vm2, %v810_v14 }
 0x384   : > { %1679 = vmatpush3.msra.mxu1 %v976_v11  ;;  %1680 = vmatprep.mubr.msk.f32.mxu1 %vm2066_vm0, %v2065_v0 }
 0x385   : > { %1688 = vmatprep.subr.mxu1 %v2065_v0 }
 0x3da   : > { %v971_v15 = vpop.xlane.xlu0 %970 }
 0x3db   : > { %1811 = vrcp.f32 %v971_v15 }
 0x3de   : > { %v1138_v16 = vpop.xlane.xlu1 %1137 }
 0x3df   : > { %1813 = vrcp.f32 %v1138_v16 }
 0x3e2   : > { %v1304_v17 = vpop.xlane.xlu0 %1303  ;;  %v1308_v23 = vpop.permute.xlu1 %1307 }
 0x3e3   : > { %1815 = vrcp.f32 %v1304_v17 }
 0x3e6   : > { %v1142_v20 = vpop.permute.xlu0 %1141 }
 0x3e8   : > { %v1812_v18 = vpop.eup %1811 }
 0x3e9   : > { %v973_v19 = vmul.f32 %v1812_v18, %v1804_v5 }
 0x3eb   : > { %1681 = vmatmul.mubr.msk.f32.vlgmr.msra.gmra.mxu1 %vm719_vm2, %v973_v19 }
 0x3ec   : > { %v1814_v21 = vpop.eup %1813  ;;  %1689 = vmatpush3.msra.mxu1 %v1142_v20  ;;  %1690 = vmatprep.mubr.msk.f32.mxu1 %vm2066_vm0, %v2065_v0 }
 0x3ed   : > { %1698 = vmatprep.subr.mxu1 %v2065_v0  ;;  %v1140_v22 = vmul.f32 %v1814_v21, %v1806_v7 }
 0x3ef   : > { %1691 = vmatmul.mubr.msk.f32.vlgmr.msra.gmra.mxu1 %vm719_vm2, %v1140_v22 }
 0x3f0   : > { %v1816_v24 = vpop.eup %1815  ;;  %1699 = vmatpush3.msra.mxu1 %v1308_v23  ;;  %1700 = vmatprep.mubr.msk.f32.mxu1 %vm2066_vm0, %v2065_v0 }
 0x3f1   : > { %v1306_v25 = vmul.f32 %v1816_v24, %v1808_v9 }
 0x3f3   : > { %1701 = vmatmul.mubr.msk.f32.vlgmr.msra.gmra.mxu1 %vm719_vm2, %v1306_v25 }
 0x443   : > { %v880_v26 = vpop.f32.mrf.mxu1 }
 0x445   : > { %v1672_v27 = vpop.f32.mrf.mxu1 }
 0x4ab   : > { %v1047_v28 = vpop.f32.mrf.mxu1 }
 0x4ac   : > { %1384 = vrot.lane.b32.xlu1 %v1047_v28, %s2071_s26 }
 0x4ad   : > { %v1682_v29 = vpop.f32.mrf.mxu1 }
 0x4af   : > { %v1213_v30 = vpop.f32.mrf.mxu1 }
 0x4b0   : > { %1388 = vrot.lane.b32.xlu0 %v1213_v30, %s2072_s28 }
 0x4b1   : > { %v1692_v31 = vpop.f32.mrf.mxu1 }
 0x4b3   : > { %v1379_v32 = vpop.f32.mrf.mxu1 }
 0x4b4   : > { %1392 = vrot.lane.b32.xlu1 %v1379_v32, %s2073_s25 }
 0x4b5   : > { %v1702_v0 = vpop.f32.mrf.mxu1 }
 0x51e   : > { %v1385_v33 = vpop.permute.xlu1 %1384 }
 0x51f   : > { %v1395_v35 = vsel %vm719_vm2, %v880_v26, %v1385_v33 }
 0x522   : > { %v1389_v34 = vpop.permute.xlu0 %1388 }
 0x523   : > { %v1397_v36 = vsel %vm1396_vm5, %v1395_v35, %v1389_v34 }
 0x526   : > { %v1393_v37 = vpop.permute.xlu1 %1392 }
 0x527   : > { %v1399_v38 = vsel %vm1398_vm6, %v1397_v36, %v1393_v37 }
 0x528   : > { %1400 = vst.msk [vmem:[%s462_s23] sm:$0xff] %vm478_vm1, %v1399_v38 }
 0x529   : > { %1992 = shalt.err (!%p1989_p11)
}
 0x52a   : > { %s1993_s29 = scalar_lea.hbm %s2463_s9, 128  ;;  %s1997_s24 = scalar_lea.hbm %s2564_s22, 256 }
 0x52b   : > { %p1994_p5 = scmp.ne.s32.totalorder %s2463_s9, %s1993_s29  ;;  %p1998_p2 = scmp.lt.s32.totalorder %s2463_s9, %s2564_s22 }
 0x52c   : > { %p1999_p13 = scmp.lt.s32.totalorder %s1997_s24, %s1993_s29 }
 0x52d   : > { %p1995_p10 = pnand %p1994_p5, %p2565_p7 }
 0x52e   : > { %p2000_p1 = por %p1999_p13, %p1998_p2 }
 0x52f   : > { %p1996_p9 = pneg %p1995_p10 }
 0x531   : > { %p2001_p12 = pnand %p2000_p1, %p1996_p9 }
 0x533   : > { %2004 = shalt.err (!%p2001_p12)
}
 0x534   : > { %1721 = dma.vmem_to_hbm [thread:$0]  (%p2565_p7), %s1416_s3, 128, %s2463_s9, %s1402_s15  }
 0x535 PF: > { %s2566_s27 = sld [smem:[#allocation19_spill]]  ;;  %p2569_p3 = scmp.ge.s32.totalorder %s2055_s12, 2 }
 0x536   : > { %s2567_s26 = sld [smem:[#allocation21_spill]] }
 0x53b   : > { %s1427_s28 = sand.u32 1, %s2566_s27  }
 0x53c   : > { %p2568_p0 = scmp.ne.s32.totalorder %s2567_s26, 0  ;;  %s1428_s25 = scalar_lea.sflag [#allocation4], %s1427_s28 }
 0x53e   : > { %p1744_p4 = pnand %p2569_p3, %p2568_p0 }
 0x540   : > { %p1745_p8 = pneg %p1744_p4 }
 0x542   : > { %2038 = dma.done.wait (%p1745_p8), %s1428_s25, 128  }
 0x543   : > { %2040 = vsyncadd (%p1745_p8), %s1428_s25, 4294967168  ;;  %s2570_s12 = sld [smem:[#allocation22_spill]]  ;;  %s2573_s30 = smov %s2047_s10 }
 0x544   : > { %s2571_s11 = sld [smem:[#allocation20_spill]] }
 0x545   : > { %s2572_s23 = sld [smem:[#allocation23_spill]] }
 0x549   : > { %p27_p6 = scmp.ge.s32.totalorder %s2570_s12, 4  }
 0x54a   : > { %s2574_s10 = smov %s2571_s11 }
 0x54b   : > { %s2575_s11 = smov %s2572_s23  ;;  %29 = sbr.rel (!%p27_p6) target bundleno = 14 (0xe), region = 137 }
 0x550   :  { %1433 = vsyncpa [#allocation3], 1 }
 0x551   :  { %1435 = vsyncpa [#allocation3 + $0x1], 1 }
 0x552   :  { %1436 = vsyncpa [#allocation6], 1 }
 0x553   :  { %1438 = vsyncpa [#allocation6 + $0x1], 1 }
 0x554   :  { %1439 = vsyncpa [#allocation9], 1 }
 0x555   :  { %1440 = vsyncpa [#allocation12], 1 }
 0x556   :  { %1441 = vsyncpa [#allocation4], 1 }
 0x557   :  { %1443 = vsyncpa [#allocation4 + $0x1], 1 }

</bundles_post_ra>
